<compile_context>
chip_gen: v7x
topology: tpu7x:2x2x1
jax: 0.10.0
libtpu: 0.0.40
codegen_flags: <defaults>
</compile_context>

<pallas_src>
import jax
import jax.numpy as jnp
import numpy as np
from jax.experimental import pallas as pl
from jax.experimental.pallas import tpu as pltpu


def bert_fill_kernel(allt_ref, wqkv_ref, bqkv_ref,
                     w1_ref, b1_ref, w2_ref, b2_ref,
                     w3_ref, b3_ref, w4_ref, b4_ref, out_ref):
    E = wqkv_ref.shape[0]             # encoder dim
    BT = out_ref.shape[0]             # batch tile
    K1 = allt_ref.shape[0] // BT      # tokens per example: CLS + k neighbors

    # --- single fused QKV projection: all K1 tokens folded into the M axis ---
    # [K1*BT, E] x [E, 3E] -> [K1*BT, 3E]  (Q columns pre-scaled by 1/sqrt(E))
    qkv = jnp.maximum(
        jnp.dot(allt_ref[...], wqkv_ref[...],
                preferred_element_type=jnp.float32) + bqkv_ref[...], 0.0)

    # --- attention over K1 keys, entirely on VPU/XLU/EUP (no MXU, no .T) ---
    q = qkv[0:BT, 0:E]                                        # CLS queries [BT, E]
    scores = [jnp.sum(q * qkv[j * BT:(j + 1) * BT, E:2 * E],  # [BT, 1] each
                      axis=-1, keepdims=True)
              for j in range(K1)]

    m = scores[0]
    for s in scores[1:]:
        m = jnp.maximum(m, s)
    probs = [jnp.exp(s - m) for s in scores]
    denom = probs[0]
    for p in probs[1:]:
        denom = denom + p
    inv = pl.reciprocal(denom, approx=True)                   # EUP, [BT, 1]

    rep = probs[0] * qkv[0:BT, 2 * E:3 * E]
    for j in range(1, K1):
        rep = rep + probs[j] * qkv[j * BT:(j + 1) * BT, 2 * E:3 * E]
    rep = jnp.maximum(rep * inv, 0.0)                         # [BT, E]

    # --- decoder MLP (Dropout == identity in eval mode) ---
    def linear(x, w_ref, b_ref):
        return jnp.dot(x, w_ref[...],
                       preferred_element_type=jnp.float32) + b_ref[...]

    h = jnp.maximum(linear(rep, w1_ref, b1_ref), 0.0)
    h = jnp.maximum(linear(h, w2_ref, b2_ref), 0.0)
    h = jnp.maximum(linear(h, w3_ref, b3_ref), 0.0)
    out_ref[...] = linear(h, w4_ref, b4_ref)                  # [BT, O] block store


def bert_fill_forward(cls_rep, neighbors, params, *, b_tile=8):
    """cls_rep: [B, E] f32, neighbors: [B, K, E] f32 -> [B, O] f32."""
    B, E = cls_rep.shape
    K = neighbors.shape[1]
    K1 = K + 1
    O = params["w4"].shape[1]

    # Batch tiling: multiple of 8 sublanes; pad B if needed (zero rows are
    # harmless and dropped at the end).  For large B use b_tile=256 (v6e/v7x).
    b_tile = max(8, (min(b_tile, B) + 7) // 8 * 8)
    Bp = (B + b_tile - 1) // b_tile * b_tile
    nb = Bp // b_tile

    # Hoist the cls/neighbor concat out of the kernel and pre-flatten the
    # token axis into the M dimension per tile: [nb, K1*B_TILE, E], so each
    # grid step reads one contiguous slab and needs no in-kernel reshape.
    all_t = jnp.concatenate(
        [cls_rep[None, :, :], jnp.transpose(neighbors, (1, 0, 2))], axis=0)
    if Bp != B:
        all_t = jnp.pad(all_t, ((0, 0), (0, Bp - B), (0, 0)))
    all_t = (all_t.reshape(K1, nb, b_tile, E)
                  .transpose(1, 0, 2, 3)
                  .reshape(nb, K1 * b_tile, E))

    # Fuse Q/K/V weights into one [E, 3E] matmul; fold the 1/sqrt(E) attention
    # scale into the Q columns (ReLU commutes with a positive scale).
    scale = 1.0 / jnp.sqrt(jnp.float32(E))
    wqkv = jnp.concatenate(
        [params["wq"] * scale, params["wk"], params["wv"]], axis=1)
    bqkv = jnp.concatenate(
        [params["bq"] * scale, params["bk"], params["bv"]], axis=1)

    weight_args = [wqkv, bqkv,
                   params["w1"], params["b1"], params["w2"], params["b2"],
                   params["w3"], params["b3"], params["w4"], params["b4"]]

    in_specs = [pl.BlockSpec((None, K1 * b_tile, E), lambda b: (b, 0, 0))]
    for arr in weight_args:                 # weights/biases: full blocks
        in_specs.append(pl.BlockSpec(arr.shape, lambda b: (0, 0)))

    out = pl.pallas_call(
        bert_fill_kernel,
        out_shape=jax.ShapeDtypeStruct((Bp, O), jnp.float32),
        grid=(nb,),
        in_specs=in_specs,
        out_specs=pl.BlockSpec((b_tile, O), lambda b: (b, 0)),
        compiler_params=pltpu.CompilerParams(
            dimension_semantics=("parallel",)),
    )(all_t, *weight_args)
    return out[:B]


def reference_forward(cls_rep, neighbors, params):
    """Plain-JAX reference matching PyTorch semantics."""
    B, E = cls_rep.shape
    cls3 = cls_rep[:, None, :]                                   # [B, 1, E]
    all_t = jnp.concatenate([cls3, neighbors], axis=1)           # [B, K+1, E]
    relu = lambda x: jnp.maximum(x, 0.0)
    Q = relu(cls3 @ params["wq"] + params["bq"])
    K = relu(all_t @ params["wk"] + params["bk"])
    V = relu(all_t @ params["wv"] + params["bv"])
    scores = jnp.einsum("bqe,bke->bqk", Q, K) / jnp.sqrt(jnp.float32(E))
    attn = jax.nn.softmax(scores, axis=-1)
    rep = relu(jnp.einsum("bqk,bke->bqe", attn, V))[:, 0, :]     # [B, E]
    h = relu(rep @ params["w1"] + params["b1"])
    h = relu(h @ params["w2"] + params["b2"])
    h = relu(h @ params["w3"] + params["b3"])
    return h @ params["w4"] + params["b4"]


def init_params(key, encoder_dim, hidden_dim, output_dim):
    keys = jax.random.split(key, 16)
    s = 0.05

    def lin(kw, kb, din, dout):
        w = jax.random.normal(kw, (din, dout), jnp.float32) * s
        b = jax.random.normal(kb, (1, dout), jnp.float32) * s
        return w, b

    p = {}
    p["wq"], p["bq"] = lin(keys[0], keys[1], encoder_dim, encoder_dim)
    p["wk"], p["bk"] = lin(keys[2], keys[3], encoder_dim, encoder_dim)
    p["wv"], p["bv"] = lin(keys[4], keys[5], encoder_dim, encoder_dim)
    p["w1"], p["b1"] = lin(keys[6], keys[7], encoder_dim, encoder_dim)
    p["w2"], p["b2"] = lin(keys[8], keys[9], encoder_dim, hidden_dim)
    p["w3"], p["b3"] = lin(keys[10], keys[11], hidden_dim, hidden_dim)
    p["w4"], p["b4"] = lin(keys[12], keys[13], hidden_dim, output_dim)
    return p


if __name__ == "__main__":
    B, S, VOCAB = 16, 8, 64         # batch, seq len, vocab (stand-in encoder)
    E, H, O = 32, 32, 16            # encoder_dim, hidden_dim, output_dim
    K_NN, DB = 4, 32                # annoy k, synthetic database size

    root = jax.random.PRNGKey(0)
    k_emb, k_ids, k_db, k_par = jax.random.split(root, 4)

    # ---- glue: stand-in BERT encoder (embedding lookup, take CLS position) ----
    emb_table = jax.random.normal(k_emb, (VOCAB, E), jnp.float32)
    input_ids = jax.random.randint(k_ids, (B, S), 0, VOCAB)
    input_mask = jnp.ones((B, S), jnp.int32)  # unused by the stand-in encoder
    cls_rep = emb_table[input_ids[:, 0]]                        # [B, E]

    # ---- glue: stand-in annoy (brute-force L2 top-k over synthetic db) ----
    db = jax.random.normal(k_db, (DB, E), jnp.float32)
    d2 = jnp.sum((cls_rep[:, None, :] - db[None, :, :]) ** 2, axis=-1)  # [B, DB]
    _, nn_idx = jax.lax.top_k(-d2, K_NN)                         # [B, K]
    neighbors = db[nn_idx]                                       # [B, K, E]
    neighbors_index = [int(i) for i in np.asarray(nn_idx).ravel()]

    params = init_params(k_par, E, H, O)

    out = bert_fill_forward(cls_rep, neighbors, params, b_tile=8)
    out = jax.block_until_ready(out)

    ref = reference_forward(cls_rep, neighbors, params)
    np.testing.assert_allclose(np.asarray(out), np.asarray(ref),
                               rtol=2e-3, atol=1e-5)
    assert out.shape == (B, O) and out.dtype == jnp.float32
    print("KERNEL_OK")
</pallas_src>

<mosaic_0001>
module attributes {stable_mosaic.version = 11 : i64} {
  func.func @bert_fill_kernel(%arg0: i32, %arg1: memref<1x40x32xf32, #tpu.memory_space<vmem>>, %arg2: memref<32x96xf32, #tpu.memory_space<vmem>>, %arg3: memref<1x96xf32, #tpu.memory_space<vmem>>, %arg4: memref<32x32xf32, #tpu.memory_space<vmem>>, %arg5: memref<1x32xf32, #tpu.memory_space<vmem>>, %arg6: memref<32x32xf32, #tpu.memory_space<vmem>>, %arg7: memref<1x32xf32, #tpu.memory_space<vmem>>, %arg8: memref<32x32xf32, #tpu.memory_space<vmem>>, %arg9: memref<1x32xf32, #tpu.memory_space<vmem>>, %arg10: memref<32x16xf32, #tpu.memory_space<vmem>>, %arg11: memref<1x16xf32, #tpu.memory_space<vmem>>, %arg12: memref<8x16xf32, #tpu.memory_space<vmem>>) attributes {dimension_semantics = [#tpu.dimension_semantics<parallel>], iteration_bounds = array<i64: 2>, scalar_prefetch = 0 : i64, scratch_operands = 0 : i64, tpu.core_type = #tpu.core_type<tc>, window_params = [{transform_indices = @transform_0, window_bounds = array<i64: 1, 40, 32>}, {pipeline_mode = #tpu.pipeline_mode<synchronous>, transform_indices = @transform_1, window_bounds = array<i64: 32, 96>}, {pipeline_mode = #tpu.pipeline_mode<synchronous>, transform_indices = @transform_2, window_bounds = array<i64: 1, 96>}, {pipeline_mode = #tpu.pipeline_mode<synchronous>, transform_indices = @transform_3, window_bounds = array<i64: 32, 32>}, {pipeline_mode = #tpu.pipeline_mode<synchronous>, transform_indices = @transform_4, window_bounds = array<i64: 1, 32>}, {pipeline_mode = #tpu.pipeline_mode<synchronous>, transform_indices = @transform_5, window_bounds = array<i64: 32, 32>}, {pipeline_mode = #tpu.pipeline_mode<synchronous>, transform_indices = @transform_6, window_bounds = array<i64: 1, 32>}, {pipeline_mode = #tpu.pipeline_mode<synchronous>, transform_indices = @transform_7, window_bounds = array<i64: 32, 32>}, {pipeline_mode = #tpu.pipeline_mode<synchronous>, transform_indices = @transform_8, window_bounds = array<i64: 1, 32>}, {pipeline_mode = #tpu.pipeline_mode<synchronous>, transform_indices = @transform_9, window_bounds = array<i64: 32, 16>}, {pipeline_mode = #tpu.pipeline_mode<synchronous>, transform_indices = @transform_10, window_bounds = array<i64: 1, 16>}, {transform_indices = @transform_11, window_bounds = array<i64: 8, 16>}]} {
    %c0 = arith.constant 0 : index
    %c0_0 = arith.constant 0 : index
    %c0_1 = arith.constant 0 : index
    %0 = vector.load %arg1[%c0, %c0_0, %c0_1] : memref<1x40x32xf32, #tpu.memory_space<vmem>>, vector<1x40x32xf32>
    %1 = vector.shape_cast %0 : vector<1x40x32xf32> to vector<40x32xf32>
    %c0_2 = arith.constant 0 : index
    %c0_3 = arith.constant 0 : index
    %2 = vector.load %arg2[%c0_2, %c0_3] : memref<32x96xf32, #tpu.memory_space<vmem>>, vector<32x96xf32>
    %cst = arith.constant dense<0.000000e+00> : vector<40x96xf32>
    %3 = tpu.matmul %1, %2, %cst {dimension_numbers = #tpu.dot_dimension_numbers<[1], [0], [0], [1], [0, 0, 1, 1], [], []>} : vector<40x32xf32>, vector<32x96xf32>, vector<40x96xf32> -> vector<40x96xf32>
    %c0_4 = arith.constant 0 : index
    %c0_5 = arith.constant 0 : index
    %4 = vector.load %arg3[%c0_4, %c0_5] : memref<1x96xf32, #tpu.memory_space<vmem>>, vector<1x96xf32>
    %5 = vector.broadcast %4 : vector<1x96xf32> to vector<40x96xf32>
    %6 = arith.addf %3, %5 : vector<40x96xf32>
    %cst_6 = arith.constant 0.000000e+00 : f32
    %7 = vector.broadcast %cst_6 : f32 to vector<40x96xf32>
    %8 = arith.maximumf %6, %7 : vector<40x96xf32>
    %9 = vector.extract_strided_slice %8 {offsets = [0, 0], sizes = [8, 32], strides = [1, 1]} : vector<40x96xf32> to vector<8x32xf32>
    %10 = vector.extract_strided_slice %8 {offsets = [0, 32], sizes = [8, 32], strides = [1, 1]} : vector<40x96xf32> to vector<8x32xf32>
    %11 = arith.mulf %9, %10 : vector<8x32xf32>
    %cst_7 = arith.constant dense<0.000000e+00> : vector<8xf32>
    %12 = vector.multi_reduction <add>, %11, %cst_7 [1] : vector<8x32xf32> to vector<8xf32>
    %13 = vector.shape_cast %12 : vector<8xf32> to vector<8x1xf32>
    %14 = vector.extract_strided_slice %8 {offsets = [8, 32], sizes = [8, 32], strides = [1, 1]} : vector<40x96xf32> to vector<8x32xf32>
    %15 = arith.mulf %9, %14 : vector<8x32xf32>
    %cst_8 = arith.constant dense<0.000000e+00> : vector<8xf32>
    %16 = vector.multi_reduction <add>, %15, %cst_8 [1] : vector<8x32xf32> to vector<8xf32>
    %17 = vector.shape_cast %16 : vector<8xf32> to vector<8x1xf32>
    %18 = vector.extract_strided_slice %8 {offsets = [16, 32], sizes = [8, 32], strides = [1, 1]} : vector<40x96xf32> to vector<8x32xf32>
    %19 = arith.mulf %9, %18 : vector<8x32xf32>
    %cst_9 = arith.constant dense<0.000000e+00> : vector<8xf32>
    %20 = vector.multi_reduction <add>, %19, %cst_9 [1] : vector<8x32xf32> to vector<8xf32>
    %21 = vector.shape_cast %20 : vector<8xf32> to vector<8x1xf32>
    %22 = vector.extract_strided_slice %8 {offsets = [24, 32], sizes = [8, 32], strides = [1, 1]} : vector<40x96xf32> to vector<8x32xf32>
    %23 = arith.mulf %9, %22 : vector<8x32xf32>
    %cst_10 = arith.constant dense<0.000000e+00> : vector<8xf32>
    %24 = vector.multi_reduction <add>, %23, %cst_10 [1] : vector<8x32xf32> to vector<8xf32>
    %25 = vector.shape_cast %24 : vector<8xf32> to vector<8x1xf32>
    %26 = vector.extract_strided_slice %8 {offsets = [32, 32], sizes = [8, 32], strides = [1, 1]} : vector<40x96xf32> to vector<8x32xf32>
    %27 = arith.mulf %9, %26 : vector<8x32xf32>
    %cst_11 = arith.constant dense<0.000000e+00> : vector<8xf32>
    %28 = vector.multi_reduction <add>, %27, %cst_11 [1] : vector<8x32xf32> to vector<8xf32>
    %29 = vector.shape_cast %28 : vector<8xf32> to vector<8x1xf32>
    %30 = arith.maximumf %13, %17 : vector<8x1xf32>
    %31 = arith.maximumf %30, %21 : vector<8x1xf32>
    %32 = arith.maximumf %31, %25 : vector<8x1xf32>
    %33 = arith.maximumf %32, %29 : vector<8x1xf32>
    %34 = arith.subf %13, %33 : vector<8x1xf32>
    %35 = math.exp %34 : vector<8x1xf32>
    %36 = arith.subf %17, %33 : vector<8x1xf32>
    %37 = math.exp %36 : vector<8x1xf32>
    %38 = arith.subf %21, %33 : vector<8x1xf32>
    %39 = math.exp %38 : vector<8x1xf32>
    %40 = arith.subf %25, %33 : vector<8x1xf32>
    %41 = math.exp %40 : vector<8x1xf32>
    %42 = arith.subf %29, %33 : vector<8x1xf32>
    %43 = math.exp %42 : vector<8x1xf32>
    %44 = arith.addf %35, %37 : vector<8x1xf32>
    %45 = arith.addf %44, %39 : vector<8x1xf32>
    %46 = arith.addf %45, %41 : vector<8x1xf32>
    %47 = arith.addf %46, %43 : vector<8x1xf32>
    %48 = tpu.reciprocal %47 {approx = true} : vector<8x1xf32> -> vector<8x1xf32>
    %49 = vector.extract_strided_slice %8 {offsets = [0, 64], sizes = [8, 32], strides = [1, 1]} : vector<40x96xf32> to vector<8x32xf32>
    %50 = vector.broadcast %35 : vector<8x1xf32> to vector<8x32xf32>
    %51 = arith.mulf %50, %49 : vector<8x32xf32>
    %52 = vector.extract_strided_slice %8 {offsets = [8, 64], sizes = [8, 32], strides = [1, 1]} : vector<40x96xf32> to vector<8x32xf32>
    %53 = vector.broadcast %37 : vector<8x1xf32> to vector<8x32xf32>
    %54 = arith.mulf %53, %52 : vector<8x32xf32>
    %55 = arith.addf %51, %54 : vector<8x32xf32>
    %56 = vector.extract_strided_slice %8 {offsets = [16, 64], sizes = [8, 32], strides = [1, 1]} : vector<40x96xf32> to vector<8x32xf32>
    %57 = vector.broadcast %39 : vector<8x1xf32> to vector<8x32xf32>
    %58 = arith.mulf %57, %56 : vector<8x32xf32>
    %59 = arith.addf %55, %58 : vector<8x32xf32>
    %60 = vector.extract_strided_slice %8 {offsets = [24, 64], sizes = [8, 32], strides = [1, 1]} : vector<40x96xf32> to vector<8x32xf32>
    %61 = vector.broadcast %41 : vector<8x1xf32> to vector<8x32xf32>
    %62 = arith.mulf %61, %60 : vector<8x32xf32>
    %63 = arith.addf %59, %62 : vector<8x32xf32>
    %64 = vector.extract_strided_slice %8 {offsets = [32, 64], sizes = [8, 32], strides = [1, 1]} : vector<40x96xf32> to vector<8x32xf32>
    %65 = vector.broadcast %43 : vector<8x1xf32> to vector<8x32xf32>
    %66 = arith.mulf %65, %64 : vector<8x32xf32>
    %67 = arith.addf %63, %66 : vector<8x32xf32>
    %68 = vector.broadcast %48 : vector<8x1xf32> to vector<8x32xf32>
    %69 = arith.mulf %67, %68 : vector<8x32xf32>
    %cst_12 = arith.constant 0.000000e+00 : f32
    %70 = vector.broadcast %cst_12 : f32 to vector<8x32xf32>
    %71 = arith.maximumf %69, %70 : vector<8x32xf32>
    %c0_13 = arith.constant 0 : index
    %c0_14 = arith.constant 0 : index
    %72 = vector.load %arg4[%c0_13, %c0_14] : memref<32x32xf32, #tpu.memory_space<vmem>>, vector<32x32xf32>
    %cst_15 = arith.constant dense<0.000000e+00> : vector<8x32xf32>
    %73 = tpu.matmul %71, %72, %cst_15 {dimension_numbers = #tpu.dot_dimension_numbers<[1], [0], [0], [1], [0, 0, 1, 1], [], []>} : vector<8x32xf32>, vector<32x32xf32>, vector<8x32xf32> -> vector<8x32xf32>
    %c0_16 = arith.constant 0 : index
    %c0_17 = arith.constant 0 : index
    %74 = vector.load %arg5[%c0_16, %c0_17] : memref<1x32xf32, #tpu.memory_space<vmem>>, vector<1x32xf32>
    %75 = vector.broadcast %74 : vector<1x32xf32> to vector<8x32xf32>
    %76 = arith.addf %73, %75 : vector<8x32xf32>
    %cst_18 = arith.constant 0.000000e+00 : f32
    %77 = vector.broadcast %cst_18 : f32 to vector<8x32xf32>
    %78 = arith.maximumf %76, %77 : vector<8x32xf32>
    %c0_19 = arith.constant 0 : index
    %c0_20 = arith.constant 0 : index
    %79 = vector.load %arg6[%c0_19, %c0_20] : memref<32x32xf32, #tpu.memory_space<vmem>>, vector<32x32xf32>
    %cst_21 = arith.constant dense<0.000000e+00> : vector<8x32xf32>
    %80 = tpu.matmul %78, %79, %cst_21 {dimension_numbers = #tpu.dot_dimension_numbers<[1], [0], [0], [1], [0, 0, 1, 1], [], []>} : vector<8x32xf32>, vector<32x32xf32>, vector<8x32xf32> -> vector<8x32xf32>
    %c0_22 = arith.constant 0 : index
    %c0_23 = arith.constant 0 : index
    %81 = vector.load %arg7[%c0_22, %c0_23] : memref<1x32xf32, #tpu.memory_space<vmem>>, vector<1x32xf32>
    %82 = vector.broadcast %81 : vector<1x32xf32> to vector<8x32xf32>
    %83 = arith.addf %80, %82 : vector<8x32xf32>
    %cst_24 = arith.constant 0.000000e+00 : f32
    %84 = vector.broadcast %cst_24 : f32 to vector<8x32xf32>
    %85 = arith.maximumf %83, %84 : vector<8x32xf32>
    %c0_25 = arith.constant 0 : index
    %c0_26 = arith.constant 0 : index
    %86 = vector.load %arg8[%c0_25, %c0_26] : memref<32x32xf32, #tpu.memory_space<vmem>>, vector<32x32xf32>
    %cst_27 = arith.constant dense<0.000000e+00> : vector<8x32xf32>
    %87 = tpu.matmul %85, %86, %cst_27 {dimension_numbers = #tpu.dot_dimension_numbers<[1], [0], [0], [1], [0, 0, 1, 1], [], []>} : vector<8x32xf32>, vector<32x32xf32>, vector<8x32xf32> -> vector<8x32xf32>
    %c0_28 = arith.constant 0 : index
    %c0_29 = arith.constant 0 : index
    %88 = vector.load %arg9[%c0_28, %c0_29] : memref<1x32xf32, #tpu.memory_space<vmem>>, vector<1x32xf32>
    %89 = vector.broadcast %88 : vector<1x32xf32> to vector<8x32xf32>
    %90 = arith.addf %87, %89 : vector<8x32xf32>
    %cst_30 = arith.constant 0.000000e+00 : f32
    %91 = vector.broadcast %cst_30 : f32 to vector<8x32xf32>
    %92 = arith.maximumf %90, %91 : vector<8x32xf32>
    %c0_31 = arith.constant 0 : index
    %c0_32 = arith.constant 0 : index
    %93 = vector.load %arg10[%c0_31, %c0_32] : memref<32x16xf32, #tpu.memory_space<vmem>>, vector<32x16xf32>
    %cst_33 = arith.constant dense<0.000000e+00> : vector<8x16xf32>
    %94 = tpu.matmul %92, %93, %cst_33 {dimension_numbers = #tpu.dot_dimension_numbers<[1], [0], [0], [1], [0, 0, 1, 1], [], []>} : vector<8x32xf32>, vector<32x16xf32>, vector<8x16xf32> -> vector<8x16xf32>
    %c0_34 = arith.constant 0 : index
    %c0_35 = arith.constant 0 : index
    %95 = vector.load %arg11[%c0_34, %c0_35] : memref<1x16xf32, #tpu.memory_space<vmem>>, vector<1x16xf32>
    %96 = vector.broadcast %95 : vector<1x16xf32> to vector<8x16xf32>
    %97 = arith.addf %94, %96 : vector<8x16xf32>
    %c0_36 = arith.constant 0 : index
    %c0_37 = arith.constant 0 : index
    %98 = vector.load %arg12[%c0_36, %c0_37] : memref<8x16xf32, #tpu.memory_space<vmem>>, vector<8x16xf32>
    tpu.vector_store %arg12[%c0_36, %c0_37], %97 {strides = array<i32>} : memref<8x16xf32, #tpu.memory_space<vmem>>, vector<8x16xf32>,
    return
  }
  func.func @transform_0(%arg0: i32) -> (i32, i32, i32) {
    %c0_i32 = arith.constant 0 : i32
    %c0_i32_0 = arith.constant 0 : i32
    %c0_i32_1 = arith.constant 0 : i32
    return %arg0, %c0_i32, %c0_i32_0 : i32, i32, i32
  }
  func.func @transform_1(%arg0: i32) -> (i32, i32) {
    %c0_i32 = arith.constant 0 : i32
    %c0_i32_0 = arith.constant 0 : i32
    %c0_i32_1 = arith.constant 0 : i32
    return %c0_i32, %c0_i32_0 : i32, i32
  }
  func.func @transform_2(%arg0: i32) -> (i32, i32) {
    %c0_i32 = arith.constant 0 : i32
    %c0_i32_0 = arith.constant 0 : i32
    %c0_i32_1 = arith.constant 0 : i32
    return %c0_i32, %c0_i32_0 : i32, i32
  }
  func.func @transform_3(%arg0: i32) -> (i32, i32) {
    %c0_i32 = arith.constant 0 : i32
    %c0_i32_0 = arith.constant 0 : i32
    %c0_i32_1 = arith.constant 0 : i32
    return %c0_i32, %c0_i32_0 : i32, i32
  }
  func.func @transform_4(%arg0: i32) -> (i32, i32) {
    %c0_i32 = arith.constant 0 : i32
    %c0_i32_0 = arith.constant 0 : i32
    %c0_i32_1 = arith.constant 0 : i32
    return %c0_i32, %c0_i32_0 : i32, i32
  }
  func.func @transform_5(%arg0: i32) -> (i32, i32) {
    %c0_i32 = arith.constant 0 : i32
    %c0_i32_0 = arith.constant 0 : i32
    %c0_i32_1 = arith.constant 0 : i32
    return %c0_i32, %c0_i32_0 : i32, i32
  }
  func.func @transform_6(%arg0: i32) -> (i32, i32) {
    %c0_i32 = arith.constant 0 : i32
    %c0_i32_0 = arith.constant 0 : i32
    %c0_i32_1 = arith.constant 0 : i32
    return %c0_i32, %c0_i32_0 : i32, i32
  }
  func.func @transform_7(%arg0: i32) -> (i32, i32) {
    %c0_i32 = arith.constant 0 : i32
    %c0_i32_0 = arith.constant 0 : i32
    %c0_i32_1 = arith.constant 0 : i32
    return %c0_i32, %c0_i32_0 : i32, i32
  }
  func.func @transform_8(%arg0: i32) -> (i32, i32) {
    %c0_i32 = arith.constant 0 : i32
    %c0_i32_0 = arith.constant 0 : i32
    %c0_i32_1 = arith.constant 0 : i32
    return %c0_i32, %c0_i32_0 : i32, i32
  }
  func.func @transform_9(%arg0: i32) -> (i32, i32) {
    %c0_i32 = arith.constant 0 : i32
    %c0_i32_0 = arith.constant 0 : i32
    %c0_i32_1 = arith.constant 0 : i32
    return %c0_i32, %c0_i32_0 : i32, i32
  }
  func.func @transform_10(%arg0: i32) -> (i32, i32) {
    %c0_i32 = arith.constant 0 : i32
    %c0_i32_0 = arith.constant 0 : i32
    %c0_i32_1 = arith.constant 0 : i32
    return %c0_i32, %c0_i32_0 : i32, i32
  }
  func.func @transform_11(%arg0: i32) -> (i32, i32) {
    %c0_i32 = arith.constant 0 : i32
    %c0_i32_0 = arith.constant 0 : i32
    return %arg0, %c0_i32 : i32, i32
  }
}

</mosaic_0001>

<bundles_post_ra>
// kernel: tpu_custom_call.1
= control target key start
LH: loop header
LB: loop body
LE: loop exit
PB: predicated region body
PF: predicated region fallthrough
CT: control target
= control target key end

     0   :  { %s1594_s0 = inlined_call_operand.vmem [shape: f32[2,40,32], index: 0, kind: input, shape index: {}]   ;;  %s1595_s1 = inlined_call_operand.vmem [shape: f32[32,96], index: 1, kind: input, shape index: {}]   ;;  %s1596_s2 = inlined_call_operand.vmem [shape: f32[1,96], index: 2, kind: input, shape index: {}]   ;;  %s1597_s3 = inlined_call_operand.vmem [shape: f32[32,32], index: 3, kind: input, shape index: {}]   ;;  %s1598_s4 = inlined_call_operand.vmem [shape: f32[1,32], index: 4, kind: input, shape index: {}]   ;;  %s1599_s5 = inlined_call_operand.vmem [shape: f32[32,32], index: 5, kind: input, shape index: {}]   ;;  %s1600_s6 = inlined_call_operand.vmem [shape: f32[1,32], index: 6, kind: input, shape index: {}]   ;;  %s1601_s7 = inlined_call_operand.vmem [shape: f32[32,32], index: 7, kind: input, shape index: {}]   ;;  %s1602_s8 = inlined_call_operand.vmem [shape: f32[1,32], index: 8, kind: input, shape index: {}]   ;;  %s1603_s9 = inlined_call_operand.vmem [shape: f32[32,16], index: 9, kind: input, shape index: {}]   ;;  %s1604_s10 = inlined_call_operand.vmem [shape: f32[1,16], index: 10, kind: input, shape index: {}]   ;;  %s1605_s11 = inlined_call_operand.hbm [shape: f32[16,16], index: 11, kind: output, shape index: {}]  }
   0x1   :  { %1606 = sst [smem:[#allocation5_spill]] %s1594_s0 }
   0x2   :  { %16 = vsyncpa [#allocation3], 0 }
   0x3   :  { %18 = vsyncpa [#allocation3 + $0x1], 0  ;;  %s1340_s17 = smov 0   ;;  %s1342_s18 = smov 0  }
   0x4   :  { %s1344_s19 = smov 0   ;;  %s1346_s20 = smov 0  }
   0x5 LB: > { %s1361_s21 = sadd.s32 4294967295, %s1272_s20   ;;  %s1003_s22 = sadd.s32 4294967294, %s1272_s20   ;;  %s1272_s20 = sphi %s1346_s20, %s1613_s20   ;;  %s1268_s19 = sphi %s1344_s19, %s1612_s19   ;;  %s1264_s18 = sphi %s1342_s18, %s1611_s18   ;;  %s1260_s17 = sphi %s1340_s17, %s1610_s17  }
   0x6   : > { %s1365_s23 = sadd.s32 1, %s1272_s20   ;;  %s267_s24 = sadd.s32 1, %s1268_s19 }
   0x7   : > { %s264_s25 = ssub.s32 %s1272_s20, %s1365_s23  ;;  %p277_p0 = scmp.ne.s32.totalorder %s1268_s19, %s1264_s18 }
   0x8   : > { %p265_p1 = scmp.eq.s32.totalorder %s264_s25, 0  ;;  %p278_p2 = scmp.eq.s32.totalorder %s1361_s21, 1 }
   0x9   : > { %p283_p3 = scmp.ne.s32.totalorder %s1264_s18, %s1260_s17  ;;  %p284_p4 = scmp.eq.s32.totalorder %s1003_s22, 1 }
   0xa   : > { %s1376_s26 = scalar_select %p265_p1, %s1268_s19, %s267_s24  }
   0xb   : > { %p1378_p5 = por %p278_p2, %p277_p0  ;;  %p1382_p6 = por %p284_p4, %p283_p3 }
   0xc   : > { %p1006_p7 = scmp.ge.s32.totalorder %s1272_s20, 1  ;;  %p340_p8 = scmp.lt.s32.totalorder %s1272_s20, 3 }
   0xe   : > { %p341_p9 = pnand %p1006_p7, %p340_p8 }
   0xf   : > { %v390_v0 = vld [vmem:[%s1595_s1] sm:$0xff] (!%p341_p9)  ;;  %v391_v1 = vld [vmem:[%s1595_s1 + $0x8] sm:$0xff] (!%p341_p9)  ;;  %v392_v2 = vld [vmem:[%s1595_s1 + $0x10] sm:$0xff] (!%p341_p9)  ;;  %v1274_v3 = vmov (!%p341_p9), 0.0|0.0   ;;  %vm1275_vm0 = vmmov (!%p341_p9), 0   ;;  %v1276_v6 = vmov (!%p341_p9), 0.0  }
  0x10   : > { %344 = sbr.rel (%p341_p9) target bundleno = 1553 (0x611), region = 64  ;;  %1123 = vmatprep.subr.bf16.mxu0 (!%p341_p9), %v1274_v3  ;;  %v1124_v4 = vpack.c.bf16 (!%p341_p9), %v391_v1, %v390_v0  ;;  %v393_v5 = vld [vmem:[%s1595_s1 + $0x18] sm:$0xff] (!%p341_p9)  ;;  %1064 = vmatprep.mubr.msk.f32.mxu0 (!%p341_p9), %vm1275_vm0, %v1276_v6  ;;  %p380_p10 = scmp.lt.s32.totalorder (!%p341_p9), %s1361_s21, 1  ;;  %vm401_vm1 = vcmask (!%p341_p9), 261120   ;;  %v1009_v13 = vld [vmem:[%s1596_s2] ss:$0 sm:$0xff] (!%p341_p9) }
  0x11   : > { %1129 = vmatprep.subr.bf16.mxu1 (!%p341_p9), %v1274_v3  ;;  %1087 = vmatprep.mubr.msk.f32.mxu1 (!%p341_p9), %vm1275_vm0, %v1276_v6  ;;  %v1127_v7 = vpack.c.bf16 (!%p341_p9), %v393_v5, %v392_v2  ;;  %s1609_s0 = sld [smem:[#allocation5_spill]] (!%p341_p9)  ;;  %s1277_s15 = smov (!%p341_p9), 96   ;;  %v587_v49 = vld [vmem:[%s1597_s3] sm:$0xff] (!%p341_p9)  ;;  %v588_v50 = vld [vmem:[%s1597_s3 + $0x8] sm:$0xff] (!%p341_p9)  ;;  %v589_v51 = vld [vmem:[%s1597_s3 + $0x10] sm:$0xff] (!%p341_p9)  ;;  %vm928_vm2 = vcmask (!%p341_p9), 130048  }
  0x12   : > { %1125 = vmatpush3.bf16.msra.mxu0 (!%p341_p9), %v1124_v4  ;;  %v1130_v52 = vpack.c.bf16 (!%p341_p9), %v588_v50, %v587_v49  ;;  %v590_v53 = vld [vmem:[%s1597_s3 + $0x18] sm:$0xff] (!%p341_p9)  ;;  %s1278_s14 = smov (!%p341_p9), 64  }
  0x13   : > { %1126 = vmatprep.subr.bf16.mxu0 (!%p341_p9), %v1274_v3  ;;  %v1133_v54 = vpack.c.bf16 (!%p341_p9), %v590_v53, %v589_v51  ;;  %v762_v49 = vld [vmem:[%s1601_s7 + $0x18] sm:$0xff] (!%p341_p9)  ;;  %v844_v51 = vld [vmem:[%s1603_s9] sm:$0xff] (!%p341_p9) }
  0x14   : > { %1131 = vmatpush3.bf16.msra.mxu1 (!%p341_p9), %v1130_v52  ;;  %v846_v52 = vld [vmem:[%s1603_s9 + $0x10] sm:$0xff] (!%p341_p9) }
  0x15   : > { %1132 = vmatprep.subr.bf16.mxu1 (!%p341_p9), %v1274_v3 }
  0x16   : > { %1128 = vmatpush3.bf16.msra.mxu0 (!%p341_p9), %v1127_v7 }
  0x17   : > { %s381_s24 = scalar_select %p380_p10, %s1361_s21, 1  ;;  %1147 = vmatprep.subr.bf16.mxu0 %v1274_v3 }
  0x18   : > { %1134 = vmatpush3.bf16.msra.mxu1 %v1133_v54  ;;  %v847_v54 = vld [vmem:[%s1603_s9 + $0x18] sm:$0xff] }
  0x19   : > { %s1153_s25 = smul.u32 40, %s381_s24  ;;  %1135 = vmatprep.subr.bf16.mxu1 %v1274_v3 }
  0x1b   : > { %s384_s12 = scalar_lea.vmem %s1609_s0, %s1153_s25  ;;  %s1024_s25 = sshll.u32 %s1361_s21, 7 }
  0x1c   : > { %v385_v8 = vld [vmem:[%s384_s12] sm:$0xff]  ;;  %v386_v9 = vld [vmem:[%s384_s12 + $0x8] sm:$0xff]  ;;  %v387_v10 = vld [vmem:[%s384_s12 + $0x10] sm:$0xff]  ;;  %s1279_s21 = smov [#allocation2]  }
  0x1d   : > { %1065 = vmatmul.mubr.msk.f32.vlgmr.msra.gmra.mrb[0].mxu0 %vm401_vm1, %v385_v8  ;;  %v388_v11 = vld [vmem:[%s384_s12 + $0x18] sm:$0xff]  ;;  %v389_v12 = vld [vmem:[%s384_s12 + $0x20] sm:$0xff] }
  0x1e   : > { %1067 = vmatprep.mubr.msk.f32.mxu0 %vm1275_vm0, %v1276_v6 }
  0x21   : > { %1068 = vmatmul.mubr.msk.f32.gmra.mrb[2].mxu0 %vm401_vm1, %v386_v9 }
  0x22   : > { %1070 = vmatprep.mubr.msk.f32.mxu0 %vm1275_vm0, %v1276_v6 }
  0x25   : > { %1071 = vmatmul.mubr.msk.f32.gmra.mrb[4].mxu0 %vm401_vm1, %v387_v10 }
  0x26   : > { %1073 = vmatprep.mubr.msk.f32.mxu0 %vm1275_vm0, %v1276_v6 }
  0x29   : > { %1074 = vmatmul.mubr.msk.f32.gmra.mrb[6].mxu0 %vm401_vm1, %v388_v11 }
  0x2a   : > { %1076 = vmatprep.mubr.msk.f32.mxu0 %vm1275_vm0, %v1276_v6 }
  0x2d   : > { %1077 = vmatmul.mubr.msk.f32.gmra.mrb[8].mxu0 %vm401_vm1, %v389_v12 }
  0x2e   : > { %1120 = vmatprep.mubr.msk.f32.mxu0 %vm1275_vm0, %v1276_v6 }
  0xf0   : > { %v483_v14 = vpop.f32.mrb[0].mxu0 }
  0xf1   : > { %v484_v15 = vadd.f32 %v1009_v13, %v483_v14  ;;  %v1066_v16 = vpop.f32.mrb[1].mxu0 }
  0xf3   : > { %v1431_v17 = vmax.f32 %v484_v15, 0.0 }
  0xf4   : > { %v488_v18 = vpop.f32.mrb[2].mxu0 }
  0xf5   : > { %v1433_v19 = vadd.f32 %v1009_v13, %v488_v18  ;;  %513 = vrot.lane.b32.xlu0 %v1431_v17, %s1277_s15  ;;  %v1069_v20 = vpop.f32.mrb[3].mxu0 }
  0xf7   : > { %v508_v21 = vmax.f32 %v1433_v19, 0.0 }
  0xf8   : > { %v493_v22 = vpop.f32.mrb[4].mxu0 }
  0xf9   : > { %v1437_v23 = vadd.f32 %v1009_v13, %v493_v22  ;;  %521 = vrot.lane.b32.xlu0 %v508_v21, %s1277_s15  ;;  %v1072_v24 = vpop.f32.mrb[5].mxu0 }
  0xfb   : > { %v509_v25 = vmax.f32 %v1437_v23, 0.0  ;;  %v674_v23 = vld [vmem:[%s1599_s5] sm:$0xff] }
  0xfc   : > { %v498_v26 = vpop.f32.mrb[6].mxu0 }
  0xfd   : > { %v1442_v27 = vadd.f32 %v1009_v13, %v498_v26  ;;  %529 = vrot.lane.b32.xlu1 %v509_v25, %s1277_s15  ;;  %v1075_v28 = vpop.f32.mrb[7].mxu0 }
  0xff   : > { %v510_v29 = vmax.f32 %v1442_v27, 0.0 }
 0x100   : > { %v503_v30 = vpop.f32.mrb[8].mxu0 }
 0x101   : > { %v1447_v31 = vadd.f32 %v1009_v13, %v503_v30  ;;  %537 = vrot.lane.b32.xlu1 %v510_v29, %s1277_s15  ;;  %v1078_v32 = vpop.f32.mrb[9].mxu0 }
 0x103   : > { %v511_v33 = vmax.f32 %v1447_v31, 0.0  ;;  %v676_v31 = vld [vmem:[%s1599_s5 + $0x10] sm:$0xff] }
 0x105   : > { %545 = vrot.lane.b32.xlu0 %v511_v33, %s1277_s15  ;;  %s377_s15 = sand.u32 1, %s1264_s18  }
 0x106   : > { %s1007_s16 = sshll.u32 %s377_s15, 3  ;;  %s931_s22 = scalar_lea.sflag [#allocation3], %s377_s15 }
 0x107   : > { %s379_s29 = scalar_lea.vmem [#allocation2], %s1007_s16  ;;  %s1214_s16 = sshll.u32 %s1279_s21, 4  ;;  %s1215_s16 = int_to_ptr.vmem [resolvable:$false] %s1214_s16 }
 0x108   : > { %s944_s30 = sshll.u32 %s379_s29, 4  ;;  %s1216_s0 = scalar_lea.vmem %s1215_s16, 256  ;;  %s1554_s30 = int_to_ptr.vmem [resolvable:$true] %s944_s30 }
 0x109   : > { %s1210_s24 = scalar_lea.vmem %s1554_s30, 128  ;;  %p1217_p0 = scmp.lt.s32.totalorder %s1554_s30, %s1215_s16 }
 0x10a   : > { %p1211_p11 = scmp.ne.s32.totalorder %s1554_s30, %s1210_s24  ;;  %p1218_p1 = scmp.lt.s32.totalorder %s1216_s0, %s1210_s24 }
 0x10c   : > { %p1212_p12 = pnand %p1211_p11, %p1378_p5  ;;  %p1219_p2 = por %p1218_p1, %p1217_p0 }
 0x10e   : > { %p1213_p13 = pneg %p1212_p12 }
 0x110   : > { %p1220_p3 = pnand %p1219_p2, %p1213_p13 }
 0x167   : > { %v514_v34 = vpop.permute.xlu0 %513 }
 0x168   : > { %v516_v35 = vmul.f32 %v514_v34, %v1431_v17 }
 0x16a   : > { %v517_v36 = vsel %vm401_vm1, %v516_v35, 0.0 }
 0x16b   : > { %v522_v37 = vpop.permute.xlu0 %521  ;;  %518 = vadd.xlane.f32.xlu1 %v517_v36 }
 0x16c   : > { %v524_v38 = vmul.f32 %v522_v37, %v1431_v17 }
 0x16e   : > { %v525_v39 = vsel %vm401_vm1, %v524_v38, 0.0 }
 0x16f   : > { %v530_v40 = vpop.permute.xlu1 %529  ;;  %526 = vadd.xlane.f32.xlu0 %v525_v39 }
 0x170   : > { %v532_v41 = vmul.f32 %v530_v40, %v1431_v17  ;;  %v1015_v40 = vld [vmem:[%s1598_s4] ss:$0 sm:$0xff] }
 0x172   : > { %v533_v42 = vsel %vm401_vm1, %v532_v41, 0.0  ;;  %v759_v41 = vld [vmem:[%s1601_s7] sm:$0xff] }
 0x173   : > { %v538_v43 = vpop.permute.xlu1 %537  ;;  %534 = vadd.xlane.f32.xlu0 %v533_v42  ;;  %v760_v42 = vld [vmem:[%s1601_s7 + $0x8] sm:$0xff] }
 0x174   : > { %v540_v44 = vmul.f32 %v538_v43, %v1431_v17 }
 0x176   : > { %v541_v45 = vsel %vm401_vm1, %v540_v44, 0.0 }
 0x177   : > { %542 = vadd.xlane.f32.xlu1 %v541_v45  ;;  %v546_v46 = vpop.permute.xlu0 %545 }
 0x178   : > { %v548_v47 = vmul.f32 %v546_v46, %v1431_v17  ;;  %v1142_v46 = vpack.c.bf16 %v760_v42, %v759_v41 }
 0x17a   : > { %v549_v48 = vsel %vm401_vm1, %v548_v47, 0.0 }
 0x17b   : > { %550 = vadd.xlane.f32.xlu0 %v549_v48  ;;  %v761_v48 = vld [vmem:[%s1601_s7 + $0x10] sm:$0xff] }
 0x17c   : > { %v1145_v50 = vpack.c.bf16 %v762_v49, %v761_v48 }
 0x1f8   : > { %v519_v56 = vpop.xlane.xlu1 %518 }
 0x1fc   : > { %v527_v55 = vpop.xlane.xlu0 %526 }
 0x1fd   : > { %v552_v58 = vmax.f32 %v519_v56, %v527_v55 }
 0x200   : > { %v535_v57 = vpop.xlane.xlu0 %534 }
 0x201   : > { %v553_v60 = vmax.f32 %v552_v58, %v535_v57 }
 0x204   : > { %v543_v59 = vpop.xlane.xlu1 %542 }
 0x205   : > { %v554_v61 = vmax.f32 %v553_v60, %v543_v59 }
 0x208   : > { %v551_v62 = vpop.xlane.xlu0 %550 }
 0x209   : > { %v555_v63 = vmax.f32 %v554_v61, %v551_v62  ;;  %v1019_v61 = vld [vmem:[%s1602_s8] ss:$0 sm:$0xff] }
 0x20b   : > { %v556_v0 = vsub.f32 %v519_v56, %v555_v63  ;;  %v559_v1 = vsub.f32 %v527_v55, %v555_v63  ;;  %v562_v2 = vsub.f32 %v535_v57, %v555_v63  ;;  %v565_v4 = vsub.f32 %v543_v59, %v555_v63  ;;  %v1017_v56 = vld [vmem:[%s1600_s6] ss:$0 sm:$0xff] }
 0x20c   : > { %v568_v9 = vsub.f32 %v551_v62, %v555_v63  ;;  %v1151_v55 = vpack.c.bf16 %v847_v54, %v846_v52 }
 0x20d   : > { %v557_v5 = vmul.f32 1.442695, %v556_v0  ;;  %v560_v7 = vmul.f32 1.442695, %v559_v1  ;;  %v563_v8 = vmul.f32 1.442695, %v562_v2 }
 0x20e   : > { %v566_v10 = vmul.f32 1.442695, %v565_v4  ;;  %v569_v11 = vmul.f32 1.442695, %v568_v9  ;;  %v1021_v1 = vld [vmem:[%s1604_s10] ss:$0 sm:$0xff] }
 0x20f   : > { %1198 = vpow2.f32 %v557_v5 }
 0x210   : > { %1200 = vpow2.f32 %v560_v7 }
 0x211   : > { %1202 = vpow2.f32 %v563_v8 }
 0x212   : > { %1204 = vpow2.f32 %v566_v10 }
 0x213   : > { %1206 = vpow2.f32 %v569_v11 }
 0x219   : > { %v1199_v12 = vpop.eup %1198 }
 0x21a   : > { %v1201_v13 = vpop.eup %1200  ;;  %v576_v16 = vmul.f32 %v1199_v12, %v1431_v17 }
 0x21b   : > { %v571_v14 = vadd.f32 %v1201_v13, %v1199_v12  ;;  %v1203_v15 = vpop.eup %1202  ;;  %v577_v18 = vmul.f32 %v1201_v13, %v508_v21 }
 0x21c   : > { %v1205_v22 = vpop.eup %1204  ;;  %v579_v32 = vmul.f32 %v1203_v15, %v509_v25  ;;  %v675_v25 = vld [vmem:[%s1599_s5 + $0x8] sm:$0xff] }
 0x21d   : > { %v572_v20 = vadd.f32 %v1203_v15, %v571_v14  ;;  %v1207_v26 = vpop.eup %1206  ;;  %v578_v28 = vadd.f32 %v577_v18, %v576_v16  ;;  %v581_v35 = vmul.f32 %v1205_v22, %v510_v29  ;;  %v1136_v27 = vpack.c.bf16 %v675_v25, %v674_v23 }
 0x21e   : > { %v583_v17 = vmul.f32 %v1207_v26, %v511_v33  ;;  %v677_v33 = vld [vmem:[%s1599_s5 + $0x18] sm:$0xff] }
 0x21f   : > { %v573_v24 = vadd.f32 %v1205_v22, %v572_v20  ;;  %v580_v34 = vadd.f32 %v579_v32, %v578_v28  ;;  %v1139_v39 = vpack.c.bf16 %v677_v33, %v676_v31 }
 0x221   : > { %v574_v30 = vadd.f32 %v1207_v26, %v573_v24  ;;  %v582_v36 = vadd.f32 %v581_v35, %v580_v34 }
 0x223   : > { %1208 = vrcp.f32 %v574_v30  ;;  %v584_v19 = vadd.f32 %v583_v17, %v582_v36 }
 0x22d   : > { %v1209_v21 = vpop.eup %1208 }
 0x22e   : > { %v585_v37 = vmul.f32 %v1209_v21, %v584_v19 }
 0x230   : > { %v586_v38 = vmax.f32 %v585_v37, 0.0 }
 0x232   : > { %599 = vrot.lane.b32.xlu1 %v586_v38, %s1278_s14  ;;  %s1552_s14 = scalar_lea.hbm %s1605_s11, %s1024_s25 }
 0x2a4   : > { %v600_v29 = vpop.permute.xlu1 %599 }
 0x2a5   : > { %1088 = vmatmul.mubr.msk.f32.vlgmr.msra.gmra.mrb[0].mxu1 %vm401_vm1, %v600_v29 }
 0x2a6   : > { %1137 = vmatpush3.bf16.msra.mxu1 %v1136_v27  ;;  %1098 = vmatprep.mubr.msk.f32.mxu1 %vm1275_vm0, %v1276_v6 }
 0x2a7   : > { %1138 = vmatprep.subr.bf16.mxu1 %v1274_v3 }
 0x2aa   : > { %1140 = vmatpush3.bf16.msra.mxu1 %v1139_v39 }
 0x2ab   : > { %1141 = vmatprep.subr.bf16.mxu1 %v1274_v3 }
 0x378   : > { %v669_v43 = vpop.f32.mrb[0].mxu1 }
 0x379   : > { %v670_v44 = vadd.f32 %v1015_v40, %v669_v43  ;;  %v1089_v45 = vpop.f32.mrb[1].mxu1 }
 0x37b   : > { %v673_v47 = vmax.f32 %v670_v44, 0.0 }
 0x37d   : > { %1099 = vmatmul.mubr.msk.f32.vlgmr.msra.gmra.mrb[2].mxu1 %vm401_vm1, %v673_v47 }
 0x37e   : > { %1143 = vmatpush3.bf16.msra.mxu1 %v1142_v46  ;;  %1109 = vmatprep.mubr.msk.f32.mxu1 %vm1275_vm0, %v1276_v6  ;;  %v845_v6 = vld [vmem:[%s1603_s9 + $0x8] sm:$0xff] }
 0x37f   : > { %1144 = vmatprep.subr.bf16.mxu1 %v1274_v3  ;;  %v1148_v53 = vpack.c.bf16 %v845_v6, %v844_v51 }
 0x381   : > { %1149 = vmatpush3.bf16.msra.mxu0 %v1148_v53 }
 0x382   : > { %1146 = vmatpush3.bf16.msra.mxu1 %v1145_v50  ;;  %1150 = vmatprep.subr.bf16.mxu0 %v1274_v3 }
 0x385   : > { %1152 = vmatpush3.bf16.msra.mxu0 %v1151_v55 }
 0x450   : > { %v754_v57 = vpop.f32.mrb[2].mxu1 }
 0x451   : > { %v755_v58 = vadd.f32 %v1017_v56, %v754_v57  ;;  %v1100_v59 = vpop.f32.mrb[3].mxu1 }
 0x453   : > { %v758_v60 = vmax.f32 %v755_v58, 0.0 }
 0x455   : > { %1110 = vmatmul.mubr.msk.f32.vlgmr.msra.gmra.mrb[4].mxu1 %vm401_vm1, %v758_v60 }
 0x528   : > { %v839_v62 = vpop.f32.mrb[4].mxu1 }
 0x529   : > { %v840_v63 = vadd.f32 %v1019_v61, %v839_v62  ;;  %v1111_v0 = vpop.f32.mrb[5].mxu1 }
 0x52b   : > { %v843_v3 = vmax.f32 %v840_v63, 0.0 }
 0x52d   : > { %1121 = vmatmul.mubr.msk.f32.vlgmr.msra.gmra.mrb[10].mxu0 %vm401_vm1, %v843_v3 }
 0x600   : > { %v924_v2 = vpop.f32.mrb[10].mxu0 }
 0x601   : > { %v925_v4 = vadd.f32 %v1021_v1, %v924_v2  ;;  %v1122_v5 = vpop.f32.mrb[11].mxu0 }
 0x603   : > { %929 = vst.msk [vmem:[%s379_s29] sm:$0xff] %vm928_vm2, %v925_v4 }
 0x604   : > { %1223 = shalt.err (!%p1220_p3)
}
 0x605   : > { %s1224_s15 = scalar_lea.hbm %s1552_s14, 128  ;;  %s1228_s12 = scalar_lea.hbm %s1605_s11, 256 }
 0x606   : > { %p1225_p4 = scmp.ne.s32.totalorder %s1552_s14, %s1224_s15  ;;  %p1229_p9 = scmp.lt.u32.totalorder %s1552_s14, %s1605_s11 }
 0x607   : > { %p1230_p10 = scmp.lt.u32.totalorder %s1228_s12, %s1224_s15  ;;  %p1232_p12 = scmp.lt.u32.totalorder %s1224_s15, %s1552_s14 }
 0x608   : > { %p1226_p7 = pnand %p1225_p4, %p1378_p5 }
 0x609   : > { %p1231_p11 = por %p1230_p10, %p1229_p9 }
 0x60a   : > { %p1227_p8 = pneg %p1226_p7 }
 0x60b   : > { %p1233_p13 = por %p1232_p12, %p1231_p11 }
 0x60d   : > { %p1234_p0 = pnand %p1233_p13, %p1227_p8 }
 0x60f   : > { %1237 = shalt.err (!%p1234_p0)
}
 0x610   : > { %1154 = dma.vmem_to_hbm [thread:$0]  (%p1378_p5), %s1554_s30, 128, %s1552_s14, %s931_s22  }
 0x611 PF: > { %p1160_p1 = scmp.ge.s32.totalorder %s1272_s20, 2  ;;  %s956_s0 = sand.u32 1, %s1260_s17  }
 0x612   : > { %s957_s24 = scalar_lea.sflag [#allocation3], %s956_s0 }
 0x613   : > { %p1157_p2 = pnand %p1160_p1, %p1382_p6 }
 0x615   : > { %1255 = dma.done.wait (!%p1157_p2), %s957_s24, 128  }
 0x616   : > { %1257 = vsyncadd (!%p1157_p2), %s957_s24, 4294967168  ;;  %p21_p3 = scmp.ge.s32.totalorder %s1365_s23, 4   ;;  %s1610_s17 = smov %s1264_s18 }
 0x617   : > { %s1611_s18 = smov %s1268_s19  ;;  %s1612_s19 = smov %s1376_s26 }
 0x618   : > { %s1613_s20 = smov %s1365_s23  ;;  %23 = sbr.rel (!%p21_p3) target bundleno = 5 (0x5), region = 99 }
 0x61f   :  { %962 = vsyncpa [#allocation3], 1 }
 0x620   :  { %964 = vsyncpa [#allocation3 + $0x1], 1 }

</bundles_post_ra>
